<compile_context>
chip_gen: v7x
topology: tpu7x:2x2x1
jax: 0.10.0
libtpu: 0.0.40
codegen_flags: <defaults>
</compile_context>

<pallas_src>
import functools

import jax
import jax.numpy as jnp
from jax.experimental import pallas as pl
from jax.experimental.pallas import tpu as pltpu


def _round_up(x, m):
    return (x + m - 1) // m * m


def _pad2d(a, rows, cols):
    return jnp.pad(a, ((0, rows - a.shape[0]), (0, cols - a.shape[1])))


# --------------------------------------------------------------------------
# Kernel 1: streaming global-average-pool over (B*C, H*W)
# --------------------------------------------------------------------------
def _pick_row_tile(R, cap=128):
    """Largest multiple of 8 dividing R (<= cap); full R if R % 8 != 0."""
    if R % 8 != 0:
        return R                      # full-dim block (legal), single row tile
    best, d = 8, 8
    while d <= min(R, cap):
        if R % d == 0:
            best = d
        d += 8
    if best == R and R >= 16:
        # leave >= 2 row tiles so the "parallel" axis can feed both v7x cores
        d, best2 = 8, 8
        while d <= R // 2:
            if R % d == 0:
                best2 = d
            d += 8
        best = best2
    return best


def _pick_hw_tile(hw, row_tile, max_block_bytes):
    """Largest multiple of 128 dividing hw whose f32 block fits the budget."""
    if hw % 128 != 0:
        return hw                     # odd spatial size: single full-hw step
    n_units = hw // 128
    max_units = max(1, max_block_bytes // (row_tile * 128 * 4))
    best = 1
    for d in range(1, n_units + 1):
        if n_units % d == 0 and d <= max_units:
            best = d
    return best * 128


def _make_pool_kernel(n_chunks, rem, inv_hw):
    def kernel(img_ref, out_ref, acc_ref):
        s = pl.program_id(1)

        @pl.when(s == 0)
        def _init():
            acc_ref[...] = jnp.zeros_like(acc_ref)

        tile = img_ref[...].astype(jnp.float32)       # (row_tile, hw_tile)
        acc = acc_ref[...]                            # (row_tile, 128) f32
        for j in range(n_chunks):                     # lane-aligned VPU adds
            acc = acc + tile[:, j * 128:(j + 1) * 128]
        if rem:
            # ragged tail only when H*W is not a multiple of 128 (then this is
            # the single reduction step): fold the small cross-lane sum into
            # lane 0 of the wide accumulator.
            tail = jnp.sum(tile[:, n_chunks * 128:], axis=-1, keepdims=True)
            lane = jax.lax.broadcasted_iota(jnp.int32, acc.shape, 1)
            acc = acc + jnp.where(lane == 0, tail, 0.0)
        acc_ref[...] = acc

        @pl.when(s == pl.num_programs(1) - 1)
        def _finalize():
            # single deferred cross-lane reduce + mean scale
            out_ref[...] = (jnp.sum(acc_ref[...], axis=-1, keepdims=True)
                            * inv_hw).astype(out_ref.dtype)

    return kernel


def global_average_pool(image, *, max_block_bytes=8 << 20,
                        vmem_limit_bytes=48 << 20):
    """image: (B, C, H, W) -> pooled (B, C) f32, streamed straight from HBM."""
    B, C, H, W = image.shape
    hw = H * W
    R = B * C
    img = image.reshape(R, hw)        # free view of contiguous NCHW

    row_tile = _pick_row_tile(R)
    hw_tile = _pick_hw_tile(hw, row_tile, max_block_bytes)
    grid = (R // row_tile, hw // hw_tile)
    kernel = _make_pool_kernel(hw_tile // 128, hw_tile % 128, 1.0 / float(hw))

    pooled = pl.pallas_call(
        kernel,
        out_shape=jax.ShapeDtypeStruct((R, 1), jnp.float32),
        grid_spec=pltpu.PrefetchScalarGridSpec(
            num_scalar_prefetch=0,
            grid=grid,
            in_specs=[pl.BlockSpec((row_tile, hw_tile), lambda b, s: (b, s))],
            out_specs=pl.BlockSpec((row_tile, 1), lambda b, s: (b, 0)),
            scratch_shapes=[pltpu.VMEM((row_tile, 128), jnp.float32)],
        ),
        compiler_params=pltpu.CompilerParams(
            dimension_semantics=("parallel", "arbitrary"),
            vmem_limit_bytes=vmem_limit_bytes),
    )(img)
    return pooled.reshape(B, C)


# --------------------------------------------------------------------------
# Kernel 2: tiny MLP head (backbone Linear+ReLU, classifier Linear-ReLU-Linear)
# --------------------------------------------------------------------------
def _head_kernel(pooled_ref, det_ref, wbb_ref, bbb_ref,
                 w1i_ref, w1d_ref, b1_ref, w2_ref, b2_ref, out_ref):
    # backbone head: Linear(C -> F) + ReLU
    feat = jnp.dot(pooled_ref[...], wbb_ref[...],
                   preferred_element_type=jnp.float32) + bbb_ref[...]
    feat = jnp.maximum(feat, 0.0)
    # classifier: cat(feat, det) @ W1 + b1 == feat @ W1[:F] + det @ W1[F:] + b1
    h = (jnp.dot(feat, w1i_ref[...], preferred_element_type=jnp.float32)
         + jnp.dot(det_ref[...], w1d_ref[...], preferred_element_type=jnp.float32)
         + b1_ref[...])
    h = jnp.maximum(h, 0.0)
    out_ref[...] = (jnp.dot(h, w2_ref[...], preferred_element_type=jnp.float32)
                    + b2_ref[...]).astype(out_ref.dtype)


def classifier_head(pooled, det_one_hot, params):
    B, C = pooled.shape
    D = det_one_hot.shape[1]
    F = params["w_bb"].shape[1]
    hidden = params["w1_img"].shape[1]
    NC = params["w2"].shape[1]

    # zero-pad narrow dims to (8, 128) multiples; exact (padding contributes 0)
    B8 = _round_up(B, 8)
    Cp, Dp, Fp = _round_up(C, 128), _round_up(D, 128), _round_up(F, 128)
    Hp, NCp = _round_up(hidden, 128), _round_up(NC, 128)

    args = [
        _pad2d(pooled.astype(jnp.float32), B8, Cp),
        _pad2d(det_one_hot.astype(jnp.float32), B8, Dp),
        _pad2d(params["w_bb"], Cp, Fp),
        _pad2d(params["b_bb"], 1, Fp),
        _pad2d(params["w1_img"], Fp, Hp),
        _pad2d(params["w1_det"], Dp, Hp),
        _pad2d(params["b1"], 1, Hp),
        _pad2d(params["w2"], Hp, NCp),
        _pad2d(params["b2"], 1, NCp),
    ]

    def full_spec(a):
        nd = a.ndim
        return pl.BlockSpec(a.shape, lambda *_: (0,) * nd)

    out = pl.pallas_call(
        _head_kernel,
        out_shape=jax.ShapeDtypeStruct((B8, NCp), jnp.float32),
        in_specs=[full_spec(a) for a in args],
        out_specs=pl.BlockSpec((B8, NCp), lambda *_: (0, 0)),
    )(*args)
    return out[:B, :NC]


# --------------------------------------------------------------------------
# Full forward
# --------------------------------------------------------------------------
def rasnet_with_extra_input(image, det_one_hot, params, *,
                            max_block_bytes=8 << 20):
    pooled = global_average_pool(image, max_block_bytes=max_block_bytes)
    return classifier_head(pooled, det_one_hot, params)


def init_params(key, in_channels, out_features, num_detection_classes,
                num_classes, hidden=256):
    ks = jax.random.split(key, 4)
    scale = lambda fan_in: 1.0 / jnp.sqrt(jnp.float32(fan_in))
    # backbone linear: (C -> F)
    w_bb = jax.random.normal(ks[0], (in_channels, out_features), jnp.float32) * scale(in_channels)
    b_bb = jnp.zeros((1, out_features), jnp.float32)
    # classifier linear 1: (F + D -> hidden), stored split along the input axis
    w1 = jax.random.normal(ks[1], (out_features + num_detection_classes, hidden),
                           jnp.float32) * scale(out_features + num_detection_classes)
    w1_img = w1[:out_features]
    w1_det = w1[out_features:]
    b1 = jnp.zeros((1, hidden), jnp.float32)
    # classifier linear 2: (hidden -> num_classes)
    w2 = jax.random.normal(ks[2], (hidden, num_classes), jnp.float32) * scale(hidden)
    b2 = jnp.zeros((1, num_classes), jnp.float32)
    return {"w_bb": w_bb, "b_bb": b_bb,
            "w1_img": w1_img, "w1_det": w1_det, "b1": b1,
            "w2": w2, "b2": b2}


def _reference(image, det_one_hot, params):
    """Pure-JAX f32 reference of the same forward pass."""
    B, C, H, W = image.shape
    pooled = jnp.mean(image.reshape(B, C, H * W), axis=-1)
    feat = jnp.maximum(pooled @ params["w_bb"] + params["b_bb"], 0.0)
    h = jnp.maximum(feat @ params["w1_img"]
                    + det_one_hot @ params["w1_det"] + params["b1"], 0.0)
    return h @ params["w2"] + params["b2"]


if __name__ == "__main__":
    B, C, H, W = 2, 4, 16, 16
    out_features = 32
    num_detection_classes = 8
    num_classes = 10

    key = jax.random.PRNGKey(0)
    k_img, k_det, k_par = jax.random.split(key, 3)

    image = jax.random.normal(k_img, (B, C, H, W), jnp.float32)
    det_idx = jax.random.randint(k_det, (B,), 0, num_detection_classes)
    det_one_hot = jax.nn.one_hot(det_idx, num_detection_classes, dtype=jnp.float32)
    params = init_params(k_par, C, out_features, num_detection_classes, num_classes)

    # A small block budget forces hw_tile=128 (2 reduction steps) so the demo
    # exercises the accumulator / pipelined-reduction path; production sizes
    # use the multi-MiB default.
    fwd = jax.jit(functools.partial(rasnet_with_extra_input, max_block_bytes=4096))
    out = jax.block_until_ready(fwd(image, det_one_hot, params))
    assert out.shape == (B, num_classes) and out.dtype == jnp.float32

    ref = _reference(image, det_one_hot, params)
    assert jnp.allclose(out, ref, atol=1e-3, rtol=1e-3)
    print("KERNEL_OK")
</pallas_src>

<mosaic_0001>
module attributes {stable_mosaic.version = 11 : i64} {
  func.func @kernel(%arg0: i32, %arg1: i32, %arg2: memref<8x128xf32, #tpu.memory_space<vmem>>, %arg3: memref<8x1xf32, #tpu.memory_space<vmem>>, %arg4: memref<8x128xf32, #tpu.memory_space<vmem>>) attributes {dimension_semantics = [#tpu.dimension_semantics<parallel>, #tpu.dimension_semantics<arbitrary>], iteration_bounds = array<i64: 1, 2>, scalar_prefetch = 0 : i64, scratch_operands = 1 : i64, tpu.core_type = #tpu.core_type<tc>, window_params = [{transform_indices = @transform_0, window_bounds = array<i64: 8, 128>}, {transform_indices = @transform_1, window_bounds = array<i64: 8, 1>}]} {
    %c0_i32 = arith.constant 0 : i32
    %0 = arith.cmpi eq, %arg1, %c0_i32 : i32
    %1 = arith.extui %0 : i1 to i32
    %c0_i32_0 = arith.constant 0 : i32
    %2 = arith.cmpi ne, %1, %c0_i32_0 : i32
    scf.if %2 {
      %cst = arith.constant 0.000000e+00 : f32
      %10 = vector.broadcast %cst : f32 to vector<8x128xf32>
      %c0_7 = arith.constant 0 : index
      %c0_8 = arith.constant 0 : index
      %11 = vector.load %arg4[%c0_7, %c0_8] : memref<8x128xf32, #tpu.memory_space<vmem>>, vector<8x128xf32>
      tpu.vector_store %arg4[%c0_7, %c0_8], %10 {strides = array<i32>} : memref<8x128xf32, #tpu.memory_space<vmem>>, vector<8x128xf32>,
    } else {
    }
    %c0 = arith.constant 0 : index
    %c0_1 = arith.constant 0 : index
    %3 = vector.load %arg2[%c0, %c0_1] : memref<8x128xf32, #tpu.memory_space<vmem>>, vector<8x128xf32>
    %c0_2 = arith.constant 0 : index
    %c0_3 = arith.constant 0 : index
    %4 = vector.load %arg4[%c0_2, %c0_3] : memref<8x128xf32, #tpu.memory_space<vmem>>, vector<8x128xf32>
    %5 = arith.addf %4, %3 : vector<8x128xf32>
    %c0_4 = arith.constant 0 : index
    %c0_5 = arith.constant 0 : index
    %6 = vector.load %arg4[%c0_4, %c0_5] : memref<8x128xf32, #tpu.memory_space<vmem>>, vector<8x128xf32>
    tpu.vector_store %arg4[%c0_4, %c0_5], %5 {strides = array<i32>} : memref<8x128xf32, #tpu.memory_space<vmem>>, vector<8x128xf32>,
    %c1_i32 = arith.constant 1 : i32
    %7 = arith.cmpi eq, %arg1, %c1_i32 : i32
    %8 = arith.extui %7 : i1 to i32
    %c0_i32_6 = arith.constant 0 : i32
    %9 = arith.cmpi ne, %8, %c0_i32_6 : i32
    scf.if %9 {
      %c0_7 = arith.constant 0 : index
      %c0_8 = arith.constant 0 : index
      %10 = vector.load %arg4[%c0_7, %c0_8] : memref<8x128xf32, #tpu.memory_space<vmem>>, vector<8x128xf32>
      %cst = arith.constant dense<0.000000e+00> : vector<8xf32>
      %11 = vector.multi_reduction <add>, %10, %cst [1] : vector<8x128xf32> to vector<8xf32>
      %12 = vector.shape_cast %11 : vector<8xf32> to vector<8x1xf32>
      %cst_9 = arith.constant 3.906250e-03 : f32
      %13 = vector.broadcast %cst_9 : f32 to vector<8x1xf32>
      %14 = arith.mulf %12, %13 : vector<8x1xf32>
      %c0_10 = arith.constant 0 : index
      %c0_11 = arith.constant 0 : index
      %15 = vector.load %arg3[%c0_10, %c0_11] : memref<8x1xf32, #tpu.memory_space<vmem>>, vector<8x1xf32>
      tpu.vector_store %arg3[%c0_10, %c0_11], %14 {strides = array<i32>} : memref<8x1xf32, #tpu.memory_space<vmem>>, vector<8x1xf32>,
    } else {
    }
    return
  }
  func.func @transform_0(%arg0: i32, %arg1: i32) -> (i32, i32) {
    %c0_i32 = arith.constant 0 : i32
    return %arg0, %arg1 : i32, i32
  }
  func.func @transform_1(%arg0: i32, %arg1: i32) -> (i32, i32) {
    %c0_i32 = arith.constant 0 : i32
    %c0_i32_0 = arith.constant 0 : i32
    return %arg0, %c0_i32 : i32, i32
  }
}

module attributes {stable_mosaic.version = 11 : i64} {
  func.func @_head_kernel(%arg0: memref<8x128xf32, #tpu.memory_space<vmem>>, %arg1: memref<8x128xf32, #tpu.memory_space<vmem>>, %arg2: memref<128x128xf32, #tpu.memory_space<vmem>>, %arg3: memref<1x128xf32, #tpu.memory_space<vmem>>, %arg4: memref<128x256xf32, #tpu.memory_space<vmem>>, %arg5: memref<128x256xf32, #tpu.memory_space<vmem>>, %arg6: memref<1x256xf32, #tpu.memory_space<vmem>>, %arg7: memref<256x128xf32, #tpu.memory_space<vmem>>, %arg8: memref<1x128xf32, #tpu.memory_space<vmem>>, %arg9: memref<8x128xf32, #tpu.memory_space<vmem>>) attributes {dimension_semantics = [], scalar_prefetch = 0 : i64, scratch_operands = 0 : i64, tpu.core_type = #tpu.core_type<tc>} {
    %c0 = arith.constant 0 : index
    %c0_0 = arith.constant 0 : index
    %0 = vector.load %arg0[%c0, %c0_0] : memref<8x128xf32, #tpu.memory_space<vmem>>, vector<8x128xf32>
    %c0_1 = arith.constant 0 : index
    %c0_2 = arith.constant 0 : index
    %1 = vector.load %arg2[%c0_1, %c0_2] : memref<128x128xf32, #tpu.memory_space<vmem>>, vector<128x128xf32>
    %cst = arith.constant dense<0.000000e+00> : vector<8x128xf32>
    %2 = tpu.matmul %0, %1, %cst {dimension_numbers = #tpu.dot_dimension_numbers<[1], [0], [0], [1], [0, 0, 1, 1], [], []>} : vector<8x128xf32>, vector<128x128xf32>, vector<8x128xf32> -> vector<8x128xf32>
    %c0_3 = arith.constant 0 : index
    %c0_4 = arith.constant 0 : index
    %3 = vector.load %arg3[%c0_3, %c0_4] : memref<1x128xf32, #tpu.memory_space<vmem>>, vector<1x128xf32>
    %4 = vector.broadcast %3 : vector<1x128xf32> to vector<8x128xf32>
    %5 = arith.addf %2, %4 : vector<8x128xf32>
    %cst_5 = arith.constant 0.000000e+00 : f32
    %6 = vector.broadcast %cst_5 : f32 to vector<8x128xf32>
    %7 = arith.maximumf %5, %6 : vector<8x128xf32>
    %c0_6 = arith.constant 0 : index
    %c0_7 = arith.constant 0 : index
    %8 = vector.load %arg4[%c0_6, %c0_7] : memref<128x256xf32, #tpu.memory_space<vmem>>, vector<128x256xf32>
    %cst_8 = arith.constant dense<0.000000e+00> : vector<8x256xf32>
    %9 = tpu.matmul %7, %8, %cst_8 {dimension_numbers = #tpu.dot_dimension_numbers<[1], [0], [0], [1], [0, 0, 1, 1], [], []>} : vector<8x128xf32>, vector<128x256xf32>, vector<8x256xf32> -> vector<8x256xf32>
    %c0_9 = arith.constant 0 : index
    %c0_10 = arith.constant 0 : index
    %10 = vector.load %arg1[%c0_9, %c0_10] : memref<8x128xf32, #tpu.memory_space<vmem>>, vector<8x128xf32>
    %c0_11 = arith.constant 0 : index
    %c0_12 = arith.constant 0 : index
    %11 = vector.load %arg5[%c0_11, %c0_12] : memref<128x256xf32, #tpu.memory_space<vmem>>, vector<128x256xf32>
    %cst_13 = arith.constant dense<0.000000e+00> : vector<8x256xf32>
    %12 = tpu.matmul %10, %11, %cst_13 {dimension_numbers = #tpu.dot_dimension_numbers<[1], [0], [0], [1], [0, 0, 1, 1], [], []>} : vector<8x128xf32>, vector<128x256xf32>, vector<8x256xf32> -> vector<8x256xf32>
    %13 = arith.addf %9, %12 : vector<8x256xf32>
    %c0_14 = arith.constant 0 : index
    %c0_15 = arith.constant 0 : index
    %14 = vector.load %arg6[%c0_14, %c0_15] : memref<1x256xf32, #tpu.memory_space<vmem>>, vector<1x256xf32>
    %15 = vector.broadcast %14 : vector<1x256xf32> to vector<8x256xf32>
    %16 = arith.addf %13, %15 : vector<8x256xf32>
    %cst_16 = arith.constant 0.000000e+00 : f32
    %17 = vector.broadcast %cst_16 : f32 to vector<8x256xf32>
    %18 = arith.maximumf %16, %17 : vector<8x256xf32>
    %c0_17 = arith.constant 0 : index
    %c0_18 = arith.constant 0 : index
    %19 = vector.load %arg7[%c0_17, %c0_18] : memref<256x128xf32, #tpu.memory_space<vmem>>, vector<256x128xf32>
    %cst_19 = arith.constant dense<0.000000e+00> : vector<8x128xf32>
    %20 = tpu.matmul %18, %19, %cst_19 {dimension_numbers = #tpu.dot_dimension_numbers<[1], [0], [0], [1], [0, 0, 1, 1], [], []>} : vector<8x256xf32>, vector<256x128xf32>, vector<8x128xf32> -> vector<8x128xf32>
    %c0_20 = arith.constant 0 : index
    %c0_21 = arith.constant 0 : index
    %21 = vector.load %arg8[%c0_20, %c0_21] : memref<1x128xf32, #tpu.memory_space<vmem>>, vector<1x128xf32>
    %22 = vector.broadcast %21 : vector<1x128xf32> to vector<8x128xf32>
    %23 = arith.addf %20, %22 : vector<8x128xf32>
    %c0_22 = arith.constant 0 : index
    %c0_23 = arith.constant 0 : index
    %24 = vector.load %arg9[%c0_22, %c0_23] : memref<8x128xf32, #tpu.memory_space<vmem>>, vector<8x128xf32>
    tpu.vector_store %arg9[%c0_22, %c0_23], %23 {strides = array<i32>} : memref<8x128xf32, #tpu.memory_space<vmem>>, vector<8x128xf32>,
    return
  }
}

</mosaic_0001>

<bundles_post_ra>
// kernel: rasnet_with_extra_input.2
= control target key start
LH: loop header
LB: loop body
LE: loop exit
PB: predicated region body
PF: predicated region fallthrough
CT: control target
= control target key end

     0   :  { %s292_s6 = smov 0   ;;  %s294_s7 = smov 0   ;;  %s322_s0 = inlined_call_operand.vmem [shape: f32[8,256], index: 0, kind: input, shape index: {}]   ;;  %s323_s1 = inlined_call_operand.vmem [shape: f32[8,1], index: 1, kind: output, shape index: {}]  }
   0x1   :  { %s296_s8 = smov 0  }
   0x2 LB: > { %s20_s9 = sadd.s32 1, %s275_s7  ;;  %p225_p0 = scmp.ge.s32.totalorder %s279_s8, 1  ;;  %s279_s8 = sphi %s296_s8, %s11_s8   ;;  %s275_s7 = sphi %s294_s7, %s325_s7   ;;  %s271_s6 = sphi %s292_s6, %s324_s6  }
   0x3   : > { %p21_p1 = scmp.ge.s32.totalorder %s20_s9, 2  ;;  %p104_p2 = scmp.lt.s32.totalorder %s279_s8, 3 }
   0x5   : > { %s327_s9 = smov (%p21_p1, %s20_s9), 0  ;;  %p105_p3 = pnand %p225_p0, %p104_p2 }
   0x6   : > { %p128_p4 = scmp.lt.s32.totalorder (!%p105_p3), %s271_s6, 1  ;;  %p227_p5 = scmp.ne.s32.totalorder (!%p105_p3), %s271_s6, 0 }
   0x7   : > { %108 = sbr.rel (%p105_p3) target bundleno = 179 (0xb3), region = 24 }
   0xe   : > { %s129_s10 = scalar_select %p128_p4, %s271_s6, 1 }
   0xf   : > { %141 = sbr.rel (%p227_p5) target bundleno = 22 (0x16), region = 28  ;;  %v281_v0 = vmov (!%p227_p5), 0.0  }
  0x10   : > { %s226_s11 = sshll.u32 %s129_s10, 3  ;;  %142 = vst [vmem:[#allocation2] sm:$0xff] (!%p227_p5), %v281_v0 }
  0x11   : > { %s133_s14 = scalar_lea.vmem %s322_s0, %s226_s11 }
  0x16 PF: > { %v143_v1 = vld [vmem:[%s133_s14] sm:$0xff]  ;;  %p228_p6 = scmp.ne.s32.totalorder %s271_s6, 1 }
  0x17   : > { %v144_v2 = vld [vmem:[#allocation2] sm:$0xff]  ;;  %vm155_vm0 = vcmask (!%p228_p6), 7168  }
  0x18   : > { %v145_v3 = vadd.f32 %v144_v2, %v143_v1  ;;  %150 = sbr.rel (%p228_p6) target bundleno = 179 (0xb3), region = 32 }
  0x1a   : > { %146 = vst [vmem:[#allocation2] sm:$0xff] %v145_v3 }
  0x21   : > { %v151_v4 = vld [vmem:[#allocation2] sm:$0xff] }
  0x22   : > { %152 = vadd.xlane.f32.xlu0 %v151_v4 }
  0xaf   : > { %v153_v5 = vpop.xlane.xlu0 %152 }
  0xb0   : > { %v154_v6 = vmul.f32 0.00390625, %v153_v5 }
  0xb2   : > { %156 = vst.msk [vmem:[%s323_s1] sm:$0xff] %vm155_vm0, %v154_v6 }
  0xb3 PF: > { %s11_s8 = sadd.s32 1, %s279_s8   ;;  %s324_s6 = smov %s275_s7 }
  0xb4   : > { %p8_p7 = scmp.ge.s32.totalorder %s11_s8, 4   ;;  %s325_s7 = smov %s327_s9 }
  0xb6   :  { %10 = sbr.rel (!%p8_p7) target bundleno = 2 (0x2), region = 62 }

// kernel: rasnet_with_extra_input.3
= control target key start
LH: loop header
LB: loop body
LE: loop exit
PB: predicated region body
PF: predicated region fallthrough
CT: control target
= control target key end

     0   :  { %v678_v0 = vmov 0.0|0.0   ;;  %vm679_vm0 = vmmov 0   ;;  %v680_v4 = vmov 0.0   ;;  %s1096_s2 = inlined_call_operand.vmem [shape: f32[128,128], index: 2, kind: input, shape index: {}]   ;;  %s1097_s5 = inlined_call_operand.vmem [shape: f32[128,256], index: 5, kind: input, shape index: {}]   ;;  %s1098_s0 = inlined_call_operand.vmem [shape: f32[8,128], index: 0, kind: input, shape index: {}]   ;;  %s1099_s4 = inlined_call_operand.vmem [shape: f32[128,256], index: 4, kind: input, shape index: {}]   ;;  %s1100_s1 = inlined_call_operand.vmem [shape: f32[8,128], index: 1, kind: input, shape index: {}]   ;;  %s1101_s7 = inlined_call_operand.vmem [shape: f32[256,128], index: 7, kind: input, shape index: {}]   ;;  %s1102_s3 = inlined_call_operand.vmem [shape: f32[1,128], index: 3, kind: input, shape index: {}]   ;;  %s1103_s6 = inlined_call_operand.vmem [shape: f32[1,256], index: 6, kind: input, shape index: {}]   ;;  %s1104_s8 = inlined_call_operand.vmem [shape: f32[1,128], index: 8, kind: input, shape index: {}]   ;;  %s1105_s9 = inlined_call_operand.vmem [shape: f32[8,128], index: 9, kind: output, shape index: {}]  }
   0x1   :  { %553 = vmatprep.subr.bf16.mxu0 %v678_v0  ;;  %v33_v1 = vld [vmem:[%s1096_s2] sm:$0xff]  ;;  %v34_v2 = vld [vmem:[%s1096_s2 + $0x8] sm:$0xff]  ;;  %v35_v3 = vld [vmem:[%s1096_s2 + $0x10] sm:$0xff]  ;;  %550 = vmatprep.mubr.msk.f32.mxu0 %vm679_vm0, %v680_v4 }
   0x2   :  { %v554_v5 = vpack.c.bf16 %v34_v2, %v33_v1  ;;  %v36_v6 = vld [vmem:[%s1096_s2 + $0x18] sm:$0xff]  ;;  %256 = vmatprep.mubr.f32.mxu1 %v680_v4  ;;  %v37_v8 = vld [vmem:[%s1096_s2 + $0x20] sm:$0xff]  ;;  %v38_v9 = vld [vmem:[%s1096_s2 + $0x28] sm:$0xff] }
   0x3   :  { %v557_v7 = vpack.c.bf16 %v36_v6, %v35_v3  ;;  %v161_v10 = vld [vmem:[%s1097_s5 + $0x8] sm:$0xff]  ;;  %v39_v11 = vld [vmem:[%s1096_s2 + $0x30] sm:$0xff]  ;;  %v40_v12 = vld [vmem:[%s1096_s2 + $0x38] sm:$0xff]  ;;  %v560_v16 = vpack.c.bf16 %v38_v9, %v37_v8 }
   0x4   :  { %555 = vmatpush3.bf16.msra.mxu0 %v554_v5  ;;  %v163_v13 = vld [vmem:[%s1097_s5 + $0x18] sm:$0xff]  ;;  %v160_v14 = vld [vmem:[%s1097_s5] sm:$0xff]  ;;  %v162_v15 = vld [vmem:[%s1097_s5 + $0x10] sm:$0xff]  ;;  %v563_v27 = vpack.c.bf16 %v40_v12, %v39_v11 }
   0x5   :  { %556 = vmatprep.subr.bf16.mxu0 %v678_v0  ;;  %v577_v17 = vpack.c.bf16 %v163_v13, %v161_v10  ;;  %v579_v18 = vpack.c.bf16 %v162_v15, %v160_v14  ;;  %v165_v19 = vld [vmem:[%s1097_s5 + $0x28] sm:$0xff]  ;;  %v167_v20 = vld [vmem:[%s1097_s5 + $0x38] sm:$0xff]  ;;  %v164_v21 = vld [vmem:[%s1097_s5 + $0x20] sm:$0xff] }
   0x6   :  { %v581_v22 = vpack.c.bf16 %v167_v20, %v165_v19  ;;  %v166_v23 = vld [vmem:[%s1097_s5 + $0x30] sm:$0xff]  ;;  %v169_v24 = vld [vmem:[%s1097_s5 + $0x48] sm:$0xff]  ;;  %v171_v25 = vld [vmem:[%s1097_s5 + $0x58] sm:$0xff] }
   0x7   :  { %578 = vmatprep.subr.bf16.mxu1 %v577_v17  ;;  %v583_v26 = vpack.c.bf16 %v166_v23, %v164_v21  ;;  %v41_v28 = vld [vmem:[%s1096_s2 + $0x40] sm:$0xff]  ;;  %v585_v29 = vpack.c.bf16 %v171_v25, %v169_v24  ;;  %v170_v31 = vld [vmem:[%s1097_s5 + $0x50] sm:$0xff]  ;;  %v42_v32 = vld [vmem:[%s1096_s2 + $0x48] sm:$0xff] }
   0x8   :  { %558 = vmatpush3.bf16.msra.mxu0 %v557_v7  ;;  %580 = vmatpush1.bf16.msra.mxu1 %v579_v18  ;;  %v168_v30 = vld [vmem:[%s1097_s5 + $0x40] sm:$0xff]  ;;  %v173_v33 = vld [vmem:[%s1097_s5 + $0x68] sm:$0xff]  ;;  %v175_v34 = vld [vmem:[%s1097_s5 + $0x78] sm:$0xff]  ;;  %v566_v36 = vpack.c.bf16 %v42_v32, %v41_v28 }
   0x9   :  { %559 = vmatprep.subr.bf16.mxu0 %v678_v0  ;;  %582 = vmatprep.subr.bf16.mxu1 %v581_v22  ;;  %v587_v35 = vpack.c.bf16 %v170_v31, %v168_v30  ;;  %v43_v37 = vld [vmem:[%s1096_s2 + $0x50] sm:$0xff]  ;;  %v589_v38 = vpack.c.bf16 %v175_v34, %v173_v33  ;;  %v172_v39 = vld [vmem:[%s1097_s5 + $0x60] sm:$0xff]  ;;  %v44_v41 = vld [vmem:[%s1096_s2 + $0x58] sm:$0xff] }
   0xa   :  { %v174_v40 = vld [vmem:[%s1097_s5 + $0x70] sm:$0xff]  ;;  %v177_v42 = vld [vmem:[%s1097_s5 + $0x88] sm:$0xff]  ;;  %v179_v43 = vld [vmem:[%s1097_s5 + $0x98] sm:$0xff]  ;;  %v569_v45 = vpack.c.bf16 %v44_v41, %v43_v37 }
   0xb   :  { %v591_v44 = vpack.c.bf16 %v174_v40, %v172_v39  ;;  %v45_v46 = vld [vmem:[%s1096_s2 + $0x60] sm:$0xff]  ;;  %v593_v47 = vpack.c.bf16 %v179_v43, %v177_v42  ;;  %v178_v49 = vld [vmem:[%s1097_s5 + $0x90] sm:$0xff]  ;;  %v46_v50 = vld [vmem:[%s1096_s2 + $0x68] sm:$0xff] }
   0xc   :  { %561 = vmatpush3.bf16.msra.mxu0 %v560_v16  ;;  %584 = vmatpush1.bf16.msra.mxu1 %v583_v26  ;;  %v176_v48 = vld [vmem:[%s1097_s5 + $0x80] sm:$0xff]  ;;  %v181_v51 = vld [vmem:[%s1097_s5 + $0xa8] sm:$0xff]  ;;  %v183_v52 = vld [vmem:[%s1097_s5 + $0xb8] sm:$0xff]  ;;  %v572_v54 = vpack.c.bf16 %v46_v50, %v45_v46 }
   0xd   :  { %562 = vmatprep.subr.bf16.mxu0 %v678_v0  ;;  %586 = vmatprep.subr.bf16.mxu1 %v585_v29  ;;  %v595_v53 = vpack.c.bf16 %v178_v49, %v176_v48  ;;  %v47_v55 = vld [vmem:[%s1096_s2 + $0x70] sm:$0xff]  ;;  %v597_v56 = vpack.c.bf16 %v183_v52, %v181_v51  ;;  %v180_v57 = vld [vmem:[%s1097_s5 + $0xa0] sm:$0xff]  ;;  %v48_v59 = vld [vmem:[%s1096_s2 + $0x78] sm:$0xff] }
   0xe   :  { %v182_v58 = vld [vmem:[%s1097_s5 + $0xb0] sm:$0xff]  ;;  %v185_v60 = vld [vmem:[%s1097_s5 + $0xc8] sm:$0xff]  ;;  %v187_v61 = vld [vmem:[%s1097_s5 + $0xd8] sm:$0xff]  ;;  %v575_v63 = vpack.c.bf16 %v48_v59, %v47_v55 }
   0xf   :  { %v599_v62 = vpack.c.bf16 %v182_v58, %v180_v57  ;;  %v601_v1 = vpack.c.bf16 %v187_v61, %v185_v60  ;;  %v184_v2 = vld [vmem:[%s1097_s5 + $0xc0] sm:$0xff]  ;;  %v186_v3 = vld [vmem:[%s1097_s5 + $0xd0] sm:$0xff]  ;;  %v189_v5 = vld [vmem:[%s1097_s5 + $0xe8] sm:$0xff] }
  0x10   :  { %564 = vmatpush3.bf16.msra.mxu0 %v563_v27  ;;  %588 = vmatpush1.bf16.msra.mxu1 %v587_v35  ;;  %v191_v6 = vld [vmem:[%s1097_s5 + $0xf8] sm:$0xff]  ;;  %v603_v7 = vpack.c.bf16 %v186_v3, %v184_v2  ;;  %v32_v8 = vld [vmem:[%s1098_s0] sm:$0xff]  ;;  %v190_v10 = vld [vmem:[%s1097_s5 + $0xf0] sm:$0xff] }
  0x11   :  { %565 = vmatprep.subr.bf16.mxu0 %v678_v0  ;;  %590 = vmatprep.subr.bf16.mxu1 %v589_v38  ;;  %v605_v9 = vpack.c.bf16 %v191_v6, %v189_v5  ;;  %v128_v11 = vld [vmem:[%s1099_s4 + $0x8] sm:$0xff]  ;;  %v130_v12 = vld [vmem:[%s1099_s4 + $0x18] sm:$0xff]  ;;  %v127_v15 = vld [vmem:[%s1099_s4] sm:$0xff] }
  0x12   :  { %v609_v14 = vpack.c.bf16 %v130_v12, %v128_v11  ;;  %v129_v16 = vld [vmem:[%s1099_s4 + $0x10] sm:$0xff]  ;;  %v132_v17 = vld [vmem:[%s1099_s4 + $0x28] sm:$0xff]  ;;  %v134_v18 = vld [vmem:[%s1099_s4 + $0x38] sm:$0xff] }
  0x13   :  { %v159_v19 = vld [vmem:[%s1100_s1] sm:$0xff]  ;;  %v611_v20 = vpack.c.bf16 %v129_v16, %v127_v15  ;;  %v613_v21 = vpack.c.bf16 %v134_v18, %v132_v17  ;;  %v133_v23 = vld [vmem:[%s1099_s4 + $0x30] sm:$0xff]  ;;  %v136_v24 = vld [vmem:[%s1099_s4 + $0x48] sm:$0xff] }
  0x14   :  { %567 = vmatpush3.bf16.msra.mxu0 %v566_v36  ;;  %592 = vmatpush1.bf16.msra.mxu1 %v591_v44  ;;  %v131_v22 = vld [vmem:[%s1099_s4 + $0x20] sm:$0xff]  ;;  %v138_v25 = vld [vmem:[%s1099_s4 + $0x58] sm:$0xff]  ;;  %v137_v29 = vld [vmem:[%s1099_s4 + $0x50] sm:$0xff] }
  0x15   :  { %568 = vmatprep.subr.bf16.mxu0 %v678_v0  ;;  %594 = vmatprep.subr.bf16.mxu1 %v593_v47  ;;  %v615_v26 = vpack.c.bf16 %v133_v23, %v131_v22  ;;  %v617_v27 = vpack.c.bf16 %v138_v25, %v136_v24  ;;  %v135_v28 = vld [vmem:[%s1099_s4 + $0x40] sm:$0xff]  ;;  %v140_v30 = vld [vmem:[%s1099_s4 + $0x68] sm:$0xff]  ;;  %v142_v31 = vld [vmem:[%s1099_s4 + $0x78] sm:$0xff] }
  0x16   :  { %v621_v32 = vpack.c.bf16 %v142_v31, %v140_v30  ;;  %v139_v33 = vld [vmem:[%s1099_s4 + $0x60] sm:$0xff]  ;;  %v141_v34 = vld [vmem:[%s1099_s4 + $0x70] sm:$0xff]  ;;  %v144_v35 = vld [vmem:[%s1099_s4 + $0x88] sm:$0xff] }
  0x17   :  { %v146_v36 = vld [vmem:[%s1099_s4 + $0x98] sm:$0xff]  ;;  %v623_v37 = vpack.c.bf16 %v141_v34, %v139_v33  ;;  %v143_v39 = vld [vmem:[%s1099_s4 + $0x80] sm:$0xff]  ;;  %v145_v40 = vld [vmem:[%s1099_s4 + $0x90] sm:$0xff] }
  0x18   :  { %570 = vmatpush3.bf16.msra.mxu0 %v569_v45  ;;  %596 = vmatpush1.bf16.msra.mxu1 %v595_v53  ;;  %v625_v38 = vpack.c.bf16 %v146_v36, %v144_v35  ;;  %v148_v41 = vld [vmem:[%s1099_s4 + $0xa8] sm:$0xff]  ;;  %v150_v42 = vld [vmem:[%s1099_s4 + $0xb8] sm:$0xff]  ;;  %v627_v43 = vpack.c.bf16 %v145_v40, %v143_v39  ;;  %v147_v45 = vld [vmem:[%s1099_s4 + $0xa0] sm:$0xff] }
  0x19   :  { %571 = vmatprep.subr.bf16.mxu0 %v678_v0  ;;  %598 = vmatprep.subr.bf16.mxu1 %v597_v56  ;;  %v629_v44 = vpack.c.bf16 %v150_v42, %v148_v41  ;;  %v149_v46 = vld [vmem:[%s1099_s4 + $0xb0] sm:$0xff]  ;;  %v152_v47 = vld [vmem:[%s1099_s4 + $0xc8] sm:$0xff]  ;;  %v154_v48 = vld [vmem:[%s1099_s4 + $0xd8] sm:$0xff] }
  0x1a   :  { %v631_v49 = vpack.c.bf16 %v149_v46, %v147_v45  ;;  %v633_v50 = vpack.c.bf16 %v154_v48, %v152_v47  ;;  %v151_v51 = vld [vmem:[%s1099_s4 + $0xc0] sm:$0xff]  ;;  %v153_v52 = vld [vmem:[%s1099_s4 + $0xd0] sm:$0xff]  ;;  %v158_v55 = vld [vmem:[%s1099_s4 + $0xf8] sm:$0xff] }
  0x1b   :  { %v635_v53 = vpack.c.bf16 %v153_v52, %v151_v51  ;;  %v155_v57 = vld [vmem:[%s1099_s4 + $0xe0] sm:$0xff]  ;;  %v157_v58 = vld [vmem:[%s1099_s4 + $0xf0] sm:$0xff]  ;;  %v367_v61 = vld [vmem:[%s1101_s7 + $0x88] sm:$0xff] }
  0x1c   :  { %573 = vmatpush3.bf16.msra.mxu0 %v572_v54  ;;  %600 = vmatpush1.bf16.msra.mxu1 %v599_v62  ;;  %v156_v54 = vld [vmem:[%s1099_s4 + $0xe8] sm:$0xff]  ;;  %v639_v59 = vpack.c.bf16 %v157_v58, %v155_v57  ;;  %v366_v60 = vld [vmem:[%s1101_s7 + $0x80] sm:$0xff]  ;;  %v368_v2 = vld [vmem:[%s1101_s7 + $0x90] sm:$0xff] }
  0x1d   :  { %574 = vmatprep.subr.bf16.mxu0 %v678_v0  ;;  %602 = vmatprep.subr.bf16.mxu1 %v601_v1  ;;  %v188_v0 = vld [vmem:[%s1097_s5 + $0xe0] sm:$0xff]  ;;  %v637_v56 = vpack.c.bf16 %v158_v55, %v156_v54  ;;  %v351_v1 = vld [vmem:[%s1101_s7 + $0x8] sm:$0xff]  ;;  %v369_v3 = vld [vmem:[%s1101_s7 + $0x98] sm:$0xff] }
  0x1e   :  { %v607_v13 = vpack.c.bf16 %v190_v10, %v188_v0  ;;  %v350_v62 = vld [vmem:[%s1101_s7] sm:$0xff]  ;;  %v645_v6 = vpack.c.bf16 %v369_v3, %v368_v2  ;;  %v371_v0 = vld [vmem:[%s1101_s7 + $0xa8] sm:$0xff]  ;;  %v373_v15 = vld [vmem:[%s1101_s7 + $0xb8] sm:$0xff] }
  0x1f   :  { %v643_v5 = vpack.c.bf16 %v351_v1, %v350_v62  ;;  %v354_v12 = vld [vmem:[%s1101_s7 + $0x20] sm:$0xff]  ;;  %v356_v18 = vld [vmem:[%s1101_s7 + $0x30] sm:$0xff]  ;;  %v359_v25 = vld [vmem:[%s1101_s7 + $0x48] sm:$0xff] }
  0x20   :  { %576 = vmatpush3.bf16.msra.mxu0 %v575_v63  ;;  %604 = vmatpush1.bf16.msra.mxu1 %v603_v7  ;;  %v641_v63 = vpack.c.bf16 %v367_v61, %v366_v60  ;;  %v352_v7 = vld [vmem:[%s1101_s7 + $0x10] sm:$0xff]  ;;  %v358_v24 = vld [vmem:[%s1101_s7 + $0x40] sm:$0xff]  ;;  %v361_v31 = vld [vmem:[%s1101_s7 + $0x58] sm:$0xff] }
  0x21   :  { %606 = vmatprep.subr.bf16.mxu1 %v605_v9  ;;  %v370_v9 = vld [vmem:[%s1101_s7 + $0xa0] sm:$0xff]  ;;  %v360_v30 = vld [vmem:[%s1101_s7 + $0x50] sm:$0xff]  ;;  %v363_v41 = vld [vmem:[%s1101_s7 + $0x68] sm:$0xff] }
  0x22   :  { %642 = vmatprep.subr.bf16.mxu0 %v641_v63  ;;  %v649_v11 = vpack.c.bf16 %v371_v0, %v370_v9  ;;  %v663_v33 = vpack.c.bf16 %v361_v31, %v360_v30  ;;  %v464_v35 = vld [vmem:[%s1102_s3] ss:$0 sm:$0xff]  ;;  %v364_v46 = vld [vmem:[%s1101_s7 + $0x70] sm:$0xff]  ;;  %v365_v47 = vld [vmem:[%s1101_s7 + $0x78] sm:$0xff] }
  0x23   :  { %551 = vmatmul.mubr.f32.vlgmr.msra.gmra.mrb[0].mxu0 %v32_v8  ;;  %v353_v8 = vld [vmem:[%s1101_s7 + $0x18] sm:$0xff]  ;;  %v362_v40 = vld [vmem:[%s1101_s7 + $0x60] sm:$0xff]  ;;  %v671_v48 = vpack.c.bf16 %v365_v47, %v364_v46 }
  0x24   :  { %608 = vmatpush1.bf16.msra.mxu1 %v607_v13  ;;  %644 = vmatpush3.bf16.msra.mxu0 %v643_v5  ;;  %v647_v10 = vpack.c.bf16 %v353_v8, %v352_v7  ;;  %v355_v13 = vld [vmem:[%s1101_s7 + $0x28] sm:$0xff]  ;;  %v667_v42 = vpack.c.bf16 %v363_v41, %v362_v40  ;;  %v334_v52 = vld [vmem:[%s1103_s6] sm:$0x3] }
  0x25   :  { %610 = vmatprep.subr.bf16.mxu1 %v609_v14  ;;  %646 = vmatprep.subr.bf16.mxu0 %v645_v6  ;;  %v372_v14 = vld [vmem:[%s1101_s7 + $0xb0] sm:$0xff]  ;;  %v651_v16 = vpack.c.bf16 %v355_v13, %v354_v12  ;;  %v465_v63 = vld [vmem:[%s1104_s8] ss:$0 sm:$0xff] }
  0x26   :  { %v653_v17 = vpack.c.bf16 %v373_v15, %v372_v14 }
  0x27   :  { %257 = vmatmul.mubr.f32.vlgmr.msra.gmra.mrb[0].mxu1 %v159_v19  ;;  %v357_v19 = vld [vmem:[%s1101_s7 + $0x38] sm:$0xff] }
  0x28   :  { %612 = vmatpush1.bf16.msra.mxu1 %v611_v20  ;;  %327 = vmatprep.mubr.f32.mxu1 %v680_v4  ;;  %v619_v4 = vpack.c.bf16 %v137_v29, %v135_v28  ;;  %v374_v20 = vld [vmem:[%s1101_s7 + $0xc0] sm:$0xff]  ;;  %v655_v22 = vpack.c.bf16 %v357_v19, %v356_v18  ;;  %v659_v28 = vpack.c.bf16 %v359_v25, %v358_v24 }
  0x29   :  { %614 = vmatprep.subr.bf16.mxu1 %v613_v21  ;;  %648 = vmatpush3.bf16.msra.mxu0 %v647_v10  ;;  %v375_v21 = vld [vmem:[%s1101_s7 + $0xc8] sm:$0xff] }
  0x2a   :  { %650 = vmatprep.subr.bf16.mxu0 %v649_v11  ;;  %v657_v23 = vpack.c.bf16 %v375_v21, %v374_v20 }
  0x2c   :  { %616 = vmatpush1.bf16.msra.mxu1 %v615_v26  ;;  %v376_v26 = vld [vmem:[%s1101_s7 + $0xd0] sm:$0xff] }
  0x2d   :  { %618 = vmatprep.subr.bf16.mxu1 %v617_v27  ;;  %652 = vmatpush3.bf16.msra.mxu0 %v651_v16  ;;  %v377_v27 = vld [vmem:[%s1101_s7 + $0xd8] sm:$0xff] }
  0x2e   :  { %654 = vmatprep.subr.bf16.mxu0 %v653_v17  ;;  %v661_v29 = vpack.c.bf16 %v377_v27, %v376_v26 }
  0x30   :  { %620 = vmatpush1.bf16.msra.mxu1 %v619_v4  ;;  %v378_v4 = vld [vmem:[%s1101_s7 + $0xe0] sm:$0xff] }
  0x31   :  { %622 = vmatprep.subr.bf16.mxu1 %v621_v32  ;;  %656 = vmatpush3.bf16.msra.mxu0 %v655_v22  ;;  %v379_v32 = vld [vmem:[%s1101_s7 + $0xe8] sm:$0xff] }
  0x32   :  { %658 = vmatprep.subr.bf16.mxu0 %v657_v23  ;;  %v665_v34 = vpack.c.bf16 %v379_v32, %v378_v4 }
  0x34   :  { %624 = vmatpush1.bf16.msra.mxu1 %v623_v37 }
  0x35   :  { %626 = vmatprep.subr.bf16.mxu1 %v625_v38  ;;  %660 = vmatpush3.bf16.msra.mxu0 %v659_v28 }
  0x36   :  { %662 = vmatprep.subr.bf16.mxu0 %v661_v29 }
  0x38   :  { %628 = vmatpush1.bf16.msra.mxu1 %v627_v43  ;;  %v380_v43 = vld [vmem:[%s1101_s7 + $0xf0] sm:$0xff] }
  0x39   :  { %630 = vmatprep.subr.bf16.mxu1 %v629_v44  ;;  %664 = vmatpush3.bf16.msra.mxu0 %v663_v33  ;;  %v381_v44 = vld [vmem:[%s1101_s7 + $0xf8] sm:$0xff] }
  0x3a   :  { %666 = vmatprep.subr.bf16.mxu0 %v665_v34  ;;  %v669_v45 = vpack.c.bf16 %v381_v44, %v380_v43 }
  0x3c   :  { %632 = vmatpush1.bf16.msra.mxu1 %v631_v49  ;;  %v336_v49 = vlaneseq }
  0x3d   :  { %634 = vmatprep.subr.bf16.mxu1 %v633_v50  ;;  %668 = vmatpush3.bf16.msra.mxu0 %v667_v42 }
  0x3e   :  { %670 = vmatprep.subr.bf16.mxu0 %v669_v45  ;;  %v337_v50 = vshrl.u32 %v336_v49, 7 }
  0x40   :  { %636 = vmatpush1.bf16.msra.mxu1 %v635_v53  ;;  %v338_v51 = vsub.s32 0, %v337_v50  ;;  %v342_v53 = vsub.s32 1, %v337_v50 }
  0x41   :  { %638 = vmatprep.subr.bf16.mxu1 %v637_v56  ;;  %672 = vmatpush3.bf16.msra.mxu0 %v671_v48 }
  0x42   :  { %v339_v54 = vrot.slane %v334_v52, %v338_v51  ;;  %v343_v55 = vrot.slane %v334_v52, %v342_v53 }
  0x44   :  { %640 = vmatpush1.bf16.msra.mxu1 %v639_v59 }
  0xf6   :  { %v122_v36 = vpop.f32.mrb[0].mxu0 }
  0xf7   :  { %v123_v37 = vadd.f32 %v464_v35, %v122_v36  ;;  %v552_v38 = vpop.f32.mrb[1].mxu0 }
  0xf9   :  { %v126_v39 = vmax.f32 %v123_v37, 0.0 }
  0xfb   :  { %328 = vmatmul.mubr.f32.vlgmr.msra.gmra.mrb[0].mxu1 %v126_v39 }
 0x1ce   :  { %v329_v56 = vpop.f32.mrb[0].mxu1 }
 0x1cf   :  { %v346_v57 = vadd.f32 %v339_v54, %v329_v56  ;;  %v331_v58 = vpop.f32.mrb[1].mxu1 }
 0x1d0   :  { %v347_v59 = vadd.f32 %v343_v55, %v331_v58 }
 0x1d1   :  { %v348_v61 = vmax.f32 %v346_v57, 0.0 }
 0x1d2   :  { %v349_v60 = vmax.f32 %v347_v59, 0.0 }
 0x1d4   :  { %453 = vmatprep.mubr.f32.mxu0 %v349_v60 }
 0x1d5   :  { %454 = vmatmul.mubr.f32.vlgmr.msra.gmra.mrb[2].mxu0 %v348_v61 }
 0x2a8   :  { %v515_v62 = vpop.f32.mrb[2].mxu0 }
 0x2a9   :  { %v516_v1 = vpop.f32.mrb[3].mxu0 }
 0x2aa   :  { %v517_v2 = vadd.f32 %v516_v1, %v515_v62 }
 0x2ac   :  { %v456_v3 = vadd.f32 %v517_v2, %v465_v63 }
 0x2ae   :  { %459 = vst [vmem:[%s1105_s9] sm:$0xff] %v456_v3 }

</bundles_post_ra>
